<compile_context>
chip_gen: v5e
topology: v5e:2x2
jax: 0.10.0
libtpu: 0.0.40
codegen_flags: <defaults>
</compile_context>

<pallas_src>
import functools
import math

import jax
import jax.numpy as jnp
from jax.experimental import pallas as pl
from jax.experimental.pallas import tpu as pltpu


_VMEM_LIMIT = 48 * 1024 * 1024   # v7x-safe (64 MiB phys); can be raised toward 96 MiB on v6e.


# --------------------------------------------------------------------------------------
# helpers
# --------------------------------------------------------------------------------------
def _pick_tile(dim: int, preferred: int, base: int) -> int:
    """Largest tile <= preferred that is a multiple of `base` and divides `dim`.
    Falls back to the full dimension (always a legal block)."""
    if dim <= preferred:
        return dim
    t = (preferred // base) * base
    while t >= base:
        if dim % t == 0:
            return t
        t -= base
    return dim


# --------------------------------------------------------------------------------------
# Fused LayerNorm -> Linear (-> QuickGELU) kernel.
#   x block is (tm, K) with K = full feature dim, so LN stats are computed in-kernel and
#   the standalone LN HBM pass disappears. Matmul operands are bf16, accumulate f32.
# --------------------------------------------------------------------------------------
def _ln_linear_kernel(x_ref, g_ref, bln_ref, w_ref, b_ref, o_ref, *, activation, eps):
    x = x_ref[...].astype(jnp.float32)                       # (tm, K)
    mu = jnp.mean(x, axis=-1, keepdims=True)
    xc = x - mu
    var = jnp.mean(xc * xc, axis=-1, keepdims=True)
    xn = xc * jax.lax.rsqrt(var + eps)
    xn = xn * g_ref[...].astype(jnp.float32) + bln_ref[...].astype(jnp.float32)
    y = jnp.dot(xn.astype(jnp.bfloat16), w_ref[...],          # w_ref already bf16
                preferred_element_type=jnp.float32)
    y = y + b_ref[...].astype(jnp.float32)
    if activation == "quick_gelu":                            # x * sigmoid(1.702 x), EUP path
        y = y * jax.nn.sigmoid(1.702 * y)
    o_ref[...] = y.astype(o_ref.dtype)


def pallas_ln_linear(x2d, gamma, beta, w_bf, bias, *, activation=None, eps=1e-5,
                     m_tile=512, n_tile=512):
    m, k = x2d.shape
    k2, n = w_bf.shape
    assert k == k2
    tm = _pick_tile(m, m_tile, 8)
    tn = _pick_tile(n, n_tile, 128)
    return pl.pallas_call(
        functools.partial(_ln_linear_kernel, activation=activation, eps=eps),
        out_shape=jax.ShapeDtypeStruct((m, n), x2d.dtype),
        grid_spec=pltpu.PrefetchScalarGridSpec(
            num_scalar_prefetch=0,
            grid=(m // tm, n // tn),
            in_specs=[
                pl.BlockSpec((tm, k), lambda i, j: (i, 0)),
                pl.BlockSpec((1, k), lambda i, j: (0, 0)),
                pl.BlockSpec((1, k), lambda i, j: (0, 0)),
                pl.BlockSpec((k, tn), lambda i, j: (0, j)),
                pl.BlockSpec((1, tn), lambda i, j: (0, j)),
            ],
            out_specs=pl.BlockSpec((tm, tn), lambda i, j: (i, j)),
        ),
        compiler_params=pltpu.CompilerParams(
            dimension_semantics=("parallel", "parallel"),
            vmem_limit_bytes=_VMEM_LIMIT),
    )(x2d, gamma.reshape(1, k), beta.reshape(1, k), w_bf, bias.reshape(1, n))


# --------------------------------------------------------------------------------------
# Linear with fused residual-add + DropPath epilogue:
#   out = residual + scale_row * (x @ w + b), scale is a per-row (M,1) f32 column.
# --------------------------------------------------------------------------------------
def _linear_residual_kernel(x_ref, w_ref, b_ref, res_ref, scale_ref, o_ref):
    y = jnp.dot(x_ref[...].astype(jnp.bfloat16), w_ref[...],
                preferred_element_type=jnp.float32)
    y = y + b_ref[...].astype(jnp.float32)
    out = res_ref[...].astype(jnp.float32) + scale_ref[...] * y
    o_ref[...] = out.astype(o_ref.dtype)


def pallas_linear_residual(x2d, w_bf, bias, residual2d, scale_col, *,
                           m_tile=512, n_tile=512):
    m, k = x2d.shape
    k2, n = w_bf.shape
    assert k == k2 and residual2d.shape == (m, n) and scale_col.shape == (m, 1)
    tm = _pick_tile(m, m_tile, 8)
    tn = _pick_tile(n, n_tile, 128)
    return pl.pallas_call(
        _linear_residual_kernel,
        out_shape=jax.ShapeDtypeStruct((m, n), residual2d.dtype),
        grid_spec=pltpu.PrefetchScalarGridSpec(
            num_scalar_prefetch=0,
            grid=(m // tm, n // tn),
            in_specs=[
                pl.BlockSpec((tm, k), lambda i, j: (i, 0)),
                pl.BlockSpec((k, tn), lambda i, j: (0, j)),
                pl.BlockSpec((1, tn), lambda i, j: (0, j)),
                pl.BlockSpec((tm, tn), lambda i, j: (i, j)),
                pl.BlockSpec((tm, 1), lambda i, j: (i, 0)),
            ],
            out_specs=pl.BlockSpec((tm, tn), lambda i, j: (i, j)),
        ),
        compiler_params=pltpu.CompilerParams(
            dimension_semantics=("parallel", "parallel"),
            vmem_limit_bytes=_VMEM_LIMIT),
    )(x2d, w_bf, bias.reshape(1, n), residual2d, scale_col)


# --------------------------------------------------------------------------------------
# Attention core: one grid step = one batch element, ALL heads (head-batched).
# Reads the packed (N, L, 3D) QKV buffer directly (no host-side slicing / transposes).
# --------------------------------------------------------------------------------------
def _attn_kernel(*refs, heads, head_dim, d_model, sm_scale, has_mask):
    if has_mask:
        qkv_ref, mask_ref, o_ref = refs
        mask = mask_ref[...].astype(jnp.float32)               # hoisted out of head loop
    else:
        qkv_ref, o_ref = refs
        mask = None

    qkv = qkv_ref[0]                                           # (L, 3D)
    outs = []
    for h in range(heads):                                     # static unroll over heads
        a = h * head_dim
        q = qkv[:, a:a + head_dim].astype(jnp.bfloat16)
        k = qkv[:, d_model + a:d_model + a + head_dim].astype(jnp.bfloat16)
        v = qkv[:, 2 * d_model + a:2 * d_model + a + head_dim].astype(jnp.bfloat16)
        # TODO(synk): emit K pre-transposed from the QKV projection to avoid the in-VMEM
        #             RHS transpose implied by contracting on dim 1 of both operands.
        s = jax.lax.dot_general(q, k, (((1,), (1,)), ((), ())),
                                preferred_element_type=jnp.float32) * sm_scale
        if mask is not None:
            s = s + mask
        s = s - jnp.max(s, axis=-1, keepdims=True)
        p = jnp.exp(s)
        p = p * pl.reciprocal(jnp.sum(p, axis=-1, keepdims=True), approx=True)
        o = jnp.dot(p.astype(jnp.bfloat16), v, preferred_element_type=jnp.float32)
        outs.append(o)
    o_ref[0] = jnp.concatenate(outs, axis=-1).astype(o_ref.dtype)   # single lane-dense store


def pallas_attention(qkv3d, mask, *, heads, head_dim, sm_scale, out_dtype):
    n, l, three_d = qkv3d.shape
    d = heads * head_dim
    assert three_d == 3 * d
    has_mask = mask is not None

    in_specs = [pl.BlockSpec((1, l, three_d), lambda b: (b, 0, 0))]
    args = [qkv3d]
    if has_mask:
        in_specs.append(pl.BlockSpec((l, l), lambda b: (0, 0)))
        args.append(mask)

    return pl.pallas_call(
        functools.partial(_attn_kernel, heads=heads, head_dim=head_dim,
                          d_model=d, sm_scale=sm_scale, has_mask=has_mask),
        out_shape=jax.ShapeDtypeStruct((n, l, d), out_dtype),
        grid_spec=pltpu.PrefetchScalarGridSpec(
            num_scalar_prefetch=0,
            grid=(n,),
            in_specs=in_specs,
            out_specs=pl.BlockSpec((1, l, d), lambda b: (b, 0, 0)),
        ),
        compiler_params=pltpu.CompilerParams(
            dimension_semantics=("parallel",),
            vmem_limit_bytes=_VMEM_LIMIT),
    )(*args)


# --------------------------------------------------------------------------------------
# DropPath keep-mask generation (float32 randoms; exact PyTorch floor-trick semantics).
# Mask is per position along dim 0 of the (L, N, D) tensor, matching the reference code.
# --------------------------------------------------------------------------------------
def _drop_path_keep_masks(key, dpr, seq_len, training):
    masks = []
    for p in dpr:
        if training and p > 0.0:
            key, ka, kb = jax.random.split(key, 3)
            keep = 1.0 - p
            ua = jax.random.uniform(ka, (seq_len,), dtype=jnp.float32)
            ub = jax.random.uniform(kb, (seq_len,), dtype=jnp.float32)
            masks.append((jnp.floor(keep + ua).astype(jnp.int32),
                          jnp.floor(keep + ub).astype(jnp.int32)))
        else:
            ones = jnp.ones((seq_len,), jnp.int32)
            masks.append((ones, ones))
    return masks


# --------------------------------------------------------------------------------------
# Parameters (PyTorch layout: weights are (out, in) f32) + model
# --------------------------------------------------------------------------------------
def init_transformer_params(key, width, layers):
    params = []
    d = width
    for _ in range(layers):
        key, *ks = jax.random.split(key, 11)
        params.append(dict(
            ln1_g=1.0 + 0.02 * jax.random.normal(ks[0], (d,), jnp.float32),
            ln1_b=0.02 * jax.random.normal(ks[1], (d,), jnp.float32),
            w_in=0.05 * jax.random.normal(ks[2], (3 * d, d), jnp.float32),
            b_in=0.05 * jax.random.normal(ks[3], (3 * d,), jnp.float32),
            w_out=0.05 * jax.random.normal(ks[4], (d, d), jnp.float32),
            b_out=0.05 * jax.random.normal(ks[5], (d,), jnp.float32),
            ln2_g=1.0 + 0.02 * jax.random.normal(ks[6], (d,), jnp.float32),
            ln2_b=0.02 * jax.random.normal(ks[7], (d,), jnp.float32),
            w_fc=0.05 * jax.random.normal(ks[8], (4 * d, d), jnp.float32),
            b_fc=jnp.zeros((4 * d,), jnp.float32),
            w_proj=0.05 * jax.random.normal(ks[9], (d, 4 * d), jnp.float32),
            b_proj=jnp.zeros((d,), jnp.float32),
        ))
    return params


class Transformer:
    """Pallas-TPU port of the CLIP Transformer (stack of ResidualAttentionBlocks).
    Input/output layout matches PyTorch: (seq_len L, batch N, width D)."""

    def __init__(self, width, layers, heads, attn_mask=None,
                 drop_path_rate=0.0, *, params):
        assert width % heads == 0
        self.width = width
        self.layers = layers
        self.heads = heads
        self.head_dim = width // heads
        self.attn_mask = None if attn_mask is None else jnp.asarray(attn_mask, jnp.float32)
        # torch.linspace(0, drop_path_rate, layers)
        self.dpr = [drop_path_rate * i / max(layers - 1, 1) for i in range(layers)]
        # Pre-transpose to (in, out) and pre-cast weights to bf16 ONCE (MXU-native operands,
        # halved weight DMA, no per-forward XLA transpose).
        self.params = []
        for p in params:
            self.params.append(dict(
                ln1_g=jnp.asarray(p["ln1_g"], jnp.float32),
                ln1_b=jnp.asarray(p["ln1_b"], jnp.float32),
                w_in=jnp.asarray(p["w_in"].T, jnp.bfloat16),
                b_in=jnp.asarray(p["b_in"], jnp.float32),
                w_out=jnp.asarray(p["w_out"].T, jnp.bfloat16),
                b_out=jnp.asarray(p["b_out"], jnp.float32),
                ln2_g=jnp.asarray(p["ln2_g"], jnp.float32),
                ln2_b=jnp.asarray(p["ln2_b"], jnp.float32),
                w_fc=jnp.asarray(p["w_fc"].T, jnp.bfloat16),
                b_fc=jnp.asarray(p["b_fc"], jnp.float32),
                w_proj=jnp.asarray(p["w_proj"].T, jnp.bfloat16),
                b_proj=jnp.asarray(p["b_proj"], jnp.float32),
            ))

    def __call__(self, x, *, training=False, key=None):
        seq, n, d = x.shape
        h, hd = self.heads, self.head_dim
        assert d == self.width
        if training and any(p > 0.0 for p in self.dpr) and key is None:
            raise ValueError("DropPath is active in training mode: pass a PRNG key.")
        keep_masks = _drop_path_keep_masks(key, self.dpr, seq, training)
        sm_scale = 1.0 / math.sqrt(hd)

        # Work internally in (batch, seq, width): one transpose in + one out instead of
        # per-layer head-split/merge transposes and QKV slicing passes.
        x2d = jnp.transpose(x, (1, 0, 2)).reshape(n * seq, d)

        for p, drop_p, (km_attn, km_mlp) in zip(self.params, self.dpr, keep_masks):
            keep_prob = 1.0 - drop_p if (training and drop_p > 0.0) else 1.0
            # Per-row DropPath scale (row r = b*L + l depends only on l).
            sc_attn = jnp.tile(km_attn.astype(jnp.float32) / keep_prob, n).reshape(n * seq, 1)
            sc_mlp = jnp.tile(km_mlp.astype(jnp.float32) / keep_prob, n).reshape(n * seq, 1)

            # --- attention branch: fused LN+QKV -> head-batched attention -> fused
            #     out-proj + residual + DropPath ---
            qkv = pallas_ln_linear(x2d, p["ln1_g"], p["ln1_b"], p["w_in"], p["b_in"])
            attn = pallas_attention(qkv.reshape(n, seq, 3 * d), self.attn_mask,
                                    heads=h, head_dim=hd, sm_scale=sm_scale,
                                    out_dtype=x2d.dtype)
            x2d = pallas_linear_residual(attn.reshape(n * seq, d), p["w_out"],
                                         p["b_out"], x2d, sc_attn)

            # --- MLP branch: fused LN + c_fc + QuickGELU -> fused c_proj + residual ---
            hid = pallas_ln_linear(x2d, p["ln2_g"], p["ln2_b"], p["w_fc"], p["b_fc"],
                                   activation="quick_gelu")
            x2d = pallas_linear_residual(hid, p["w_proj"], p["b_proj"], x2d, sc_mlp)

        return jnp.transpose(x2d.reshape(n, seq, d), (1, 0, 2))


# --------------------------------------------------------------------------------------
# Pure-JAX reference (same math; matmul operands cast to bf16 to match the kernels'
# MXU dtype, f32 accumulation everywhere else).
# --------------------------------------------------------------------------------------
def reference_transformer_forward(params, x, attn_mask, dpr, heads,
                                  training=False, key=None):
    seq, n, d = x.shape
    h = heads
    hd = d // h
    keep_masks = _drop_path_keep_masks(key, dpr, seq, training)
    mask = None if attn_mask is None else attn_mask.astype(jnp.float32)

    def mm(a, b):
        return jax.lax.dot_general(a.astype(jnp.bfloat16), b.astype(jnp.bfloat16),
                                   (((1,), (0,)), ((), ())),
                                   preferred_element_type=jnp.float32)

    def ln(t, g, b):
        tf = t.astype(jnp.float32)
        mu = tf.mean(-1, keepdims=True)
        var = ((tf - mu) ** 2).mean(-1, keepdims=True)
        return (tf - mu) * jax.lax.rsqrt(var + 1e-5) * g + b

    for p, drop_p, (km_a, km_m) in zip(params, dpr, keep_masks):
        keep_prob = 1.0 - drop_p if (training and drop_p > 0.0) else 1.0
        x2d = x.reshape(seq * n, d)
        h1 = ln(x2d, p["ln1_g"], p["ln1_b"])
        qkv = (mm(h1, p["w_in"].T) + p["b_in"]).reshape(seq, n, 3 * d)
        q, k, v = qkv[..., :d], qkv[..., d:2 * d], qkv[..., 2 * d:]

        def sh(t):
            return t.reshape(seq, n * h, hd).transpose(1, 0, 2)

        q, k, v = sh(q), sh(k), sh(v)
        s = jnp.einsum("bld,bmd->blm", q.astype(jnp.bfloat16), k.astype(jnp.bfloat16),
                       preferred_element_type=jnp.float32) / math.sqrt(hd)
        if mask is not None:
            s = s + mask[None]
        pr = jax.nn.softmax(s, axis=-1)
        o = jnp.einsum("blm,bmd->bld", pr.astype(jnp.bfloat16), v.astype(jnp.bfloat16),
                       preferred_element_type=jnp.float32)
        o = o.transpose(1, 0, 2).reshape(seq * n, d)
        o = mm(o, p["w_out"].T) + p["b_out"]
        sa = (km_a.astype(jnp.float32) / keep_prob).reshape(seq, 1, 1)
        x = x + sa * o.reshape(seq, n, d)

        x2d = x.reshape(seq * n, d)
        h2 = ln(x2d, p["ln2_g"], p["ln2_b"])
        h2 = mm(h2, p["w_fc"].T) + p["b_fc"]
        h2 = h2 * jax.nn.sigmoid(1.702 * h2)
        h2 = mm(h2, p["w_proj"].T) + p["b_proj"]
        sm = (km_m.astype(jnp.float32) / keep_prob).reshape(seq, 1, 1)
        x = x + sm * h2.reshape(seq, n, d)
    return x


# --------------------------------------------------------------------------------------
# demo / self-check
# --------------------------------------------------------------------------------------
if __name__ == "__main__":
    # Small CLIP-like transformer: width=32, heads=4, layers=2, seq=8, batch=2.
    width, layers, heads = 32, 2, 4
    seq_len, batch = 8, 2
    drop_path_rate = 0.3

    root = jax.random.PRNGKey(0)
    k_params, k_x, k_drop = jax.random.split(root, 3)

    params = init_transformer_params(k_params, width, layers)

    # CLIP-style causal additive attention mask.
    attn_mask = jnp.triu(jnp.full((seq_len, seq_len), -1e9, jnp.float32), k=1)

    model = Transformer(width, layers, heads, attn_mask=attn_mask,
                        drop_path_rate=drop_path_rate, params=params)

    x = jax.random.normal(k_x, (seq_len, batch, width), dtype=jnp.float32)

    # Training mode: stochastic depth active (same key drives kernels and reference).
    out_train = jax.block_until_ready(model(x, training=True, key=k_drop))
    ref_train = jax.block_until_ready(
        reference_transformer_forward(params, x, attn_mask, model.dpr, heads,
                                      training=True, key=k_drop))
    assert out_train.shape == x.shape
    # bf16 MXU operands + approx reciprocal in softmax -> tolerance looser than pure f32.
    assert jnp.allclose(out_train, ref_train, atol=2e-2, rtol=2e-2), \
        float(jnp.max(jnp.abs(out_train - ref_train)))

    # Eval mode: DropPath must be the identity.
    out_eval = jax.block_until_ready(model(x, training=False))
    ref_eval = reference_transformer_forward(params, x, attn_mask, model.dpr,
                                             heads, training=False)
    assert jnp.allclose(out_eval, ref_eval, atol=2e-2, rtol=2e-2), \
        float(jnp.max(jnp.abs(out_eval - ref_eval)))

    print("KERNEL_OK")
</pallas_src>

<mosaic_0001>
module attributes {stable_mosaic.version = 11 : i64} {
  func.func @_ln_linear_kernel(%arg0: i32, %arg1: i32, %arg2: memref<16x32xf32, #tpu.memory_space<vmem>>, %arg3: memref<1x32xf32, #tpu.memory_space<vmem>>, %arg4: memref<1x32xf32, #tpu.memory_space<vmem>>, %arg5: memref<32x96xbf16, #tpu.memory_space<vmem>>, %arg6: memref<1x96xf32, #tpu.memory_space<vmem>>, %arg7: memref<16x96xf32, #tpu.memory_space<vmem>>) attributes {dimension_semantics = [#tpu.dimension_semantics<parallel>, #tpu.dimension_semantics<parallel>], iteration_bounds = array<i64: 1, 1>, scalar_prefetch = 0 : i64, scratch_operands = 0 : i64, tpu.core_type = #tpu.core_type<tc>, window_params = [{transform_indices = @transform_0, window_bounds = array<i64: 16, 32>}, {pipeline_mode = #tpu.pipeline_mode<synchronous>, transform_indices = @transform_1, window_bounds = array<i64: 1, 32>}, {pipeline_mode = #tpu.pipeline_mode<synchronous>, transform_indices = @transform_2, window_bounds = array<i64: 1, 32>}, {transform_indices = @transform_3, window_bounds = array<i64: 32, 96>}, {transform_indices = @transform_4, window_bounds = array<i64: 1, 96>}, {transform_indices = @transform_5, window_bounds = array<i64: 16, 96>}]} {
    %c0 = arith.constant 0 : index
    %c0_0 = arith.constant 0 : index
    %0 = vector.load %arg2[%c0, %c0_0] : memref<16x32xf32, #tpu.memory_space<vmem>>, vector<16x32xf32>
    %cst = arith.constant dense<0.000000e+00> : vector<16xf32>
    %1 = vector.multi_reduction <add>, %0, %cst [1] : vector<16x32xf32> to vector<16xf32>
    %2 = vector.shape_cast %1 : vector<16xf32> to vector<16x1xf32>
    %cst_1 = arith.constant 3.200000e+01 : f32
    %3 = vector.broadcast %cst_1 : f32 to vector<16x1xf32>
    %4 = arith.divf %2, %3 : vector<16x1xf32>
    %5 = vector.broadcast %4 : vector<16x1xf32> to vector<16x32xf32>
    %6 = arith.subf %0, %5 : vector<16x32xf32>
    %7 = arith.mulf %6, %6 : vector<16x32xf32>
    %cst_2 = arith.constant dense<0.000000e+00> : vector<16xf32>
    %8 = vector.multi_reduction <add>, %7, %cst_2 [1] : vector<16x32xf32> to vector<16xf32>
    %9 = vector.shape_cast %8 : vector<16xf32> to vector<16x1xf32>
    %cst_3 = arith.constant 3.200000e+01 : f32
    %10 = vector.broadcast %cst_3 : f32 to vector<16x1xf32>
    %11 = arith.divf %9, %10 : vector<16x1xf32>
    %cst_4 = arith.constant 9.99999974E-6 : f32
    %12 = vector.broadcast %cst_4 : f32 to vector<16x1xf32>
    %13 = arith.addf %11, %12 : vector<16x1xf32>
    %14 = math.rsqrt %13 : vector<16x1xf32>
    %15 = vector.broadcast %14 : vector<16x1xf32> to vector<16x32xf32>
    %16 = arith.mulf %6, %15 : vector<16x32xf32>
    %c0_5 = arith.constant 0 : index
    %c0_6 = arith.constant 0 : index
    %17 = vector.load %arg3[%c0_5, %c0_6] : memref<1x32xf32, #tpu.memory_space<vmem>>, vector<1x32xf32>
    %18 = vector.broadcast %17 : vector<1x32xf32> to vector<16x32xf32>
    %19 = arith.mulf %16, %18 : vector<16x32xf32>
    %c0_7 = arith.constant 0 : index
    %c0_8 = arith.constant 0 : index
    %20 = vector.load %arg4[%c0_7, %c0_8] : memref<1x32xf32, #tpu.memory_space<vmem>>, vector<1x32xf32>
    %21 = vector.broadcast %20 : vector<1x32xf32> to vector<16x32xf32>
    %22 = arith.addf %19, %21 : vector<16x32xf32>
    %23 = arith.truncf %22 : vector<16x32xf32> to vector<16x32xbf16>
    %c0_9 = arith.constant 0 : index
    %c0_10 = arith.constant 0 : index
    %24 = vector.load %arg5[%c0_9, %c0_10] : memref<32x96xbf16, #tpu.memory_space<vmem>>, vector<32x96xbf16>
    %cst_11 = arith.constant dense<0.000000e+00> : vector<16x96xf32>
    %25 = tpu.matmul %23, %24, %cst_11 {dimension_numbers = #tpu.dot_dimension_numbers<[1], [0], [0], [1], [0, 0, 1, 1], [], []>} : vector<16x32xbf16>, vector<32x96xbf16>, vector<16x96xf32> -> vector<16x96xf32>
    %c0_12 = arith.constant 0 : index
    %c0_13 = arith.constant 0 : index
    %26 = vector.load %arg6[%c0_12, %c0_13] : memref<1x96xf32, #tpu.memory_space<vmem>>, vector<1x96xf32>
    %27 = vector.broadcast %26 : vector<1x96xf32> to vector<16x96xf32>
    %28 = arith.addf %25, %27 : vector<16x96xf32>
    %c0_14 = arith.constant 0 : index
    %c0_15 = arith.constant 0 : index
    %29 = vector.load %arg7[%c0_14, %c0_15] : memref<16x96xf32, #tpu.memory_space<vmem>>, vector<16x96xf32>
    tpu.vector_store %arg7[%c0_14, %c0_15], %28 {strides = array<i32>} : memref<16x96xf32, #tpu.memory_space<vmem>>, vector<16x96xf32>,
    return
  }
  func.func @transform_0(%arg0: i32, %arg1: i32) -> (i32, i32) {
    %c0_i32 = arith.constant 0 : i32
    %c0_i32_0 = arith.constant 0 : i32
    return %arg0, %c0_i32 : i32, i32
  }
  func.func @transform_1(%arg0: i32, %arg1: i32) -> (i32, i32) {
    %c0_i32 = arith.constant 0 : i32
    %c0_i32_0 = arith.constant 0 : i32
    %c0_i32_1 = arith.constant 0 : i32
    return %c0_i32, %c0_i32_0 : i32, i32
  }
  func.func @transform_2(%arg0: i32, %arg1: i32) -> (i32, i32) {
    %c0_i32 = arith.constant 0 : i32
    %c0_i32_0 = arith.constant 0 : i32
    %c0_i32_1 = arith.constant 0 : i32
    return %c0_i32, %c0_i32_0 : i32, i32
  }
  func.func @transform_3(%arg0: i32, %arg1: i32) -> (i32, i32) {
    %c0_i32 = arith.constant 0 : i32
    %c0_i32_0 = arith.constant 0 : i32
    return %c0_i32, %arg1 : i32, i32
  }
  func.func @transform_4(%arg0: i32, %arg1: i32) -> (i32, i32) {
    %c0_i32 = arith.constant 0 : i32
    %c0_i32_0 = arith.constant 0 : i32
    return %c0_i32, %arg1 : i32, i32
  }
  func.func @transform_5(%arg0: i32, %arg1: i32) -> (i32, i32) {
    %c0_i32 = arith.constant 0 : i32
    return %arg0, %arg1 : i32, i32
  }
}

</mosaic_0001>

<bundles_post_ra>
// kernel: tpu_custom_call.1
= control target key start
LH: loop header
LB: loop body
LE: loop exit
PB: predicated region body
PF: predicated region fallthrough
CT: control target
= control target key end

     0   :  { %10 = vsyncpa [#allocation3], 0  ;;  %s393_s0 = inlined_call_operand.hbm [shape: f32[16,32], index: 0, kind: input, shape index: {}]   ;;  %s394_s1 = inlined_call_operand.hbm [shape: f32[1,32], index: 1, kind: input, shape index: {}]   ;;  %s395_s2 = inlined_call_operand.vmem [shape: f32[1,32], index: 2, kind: input, shape index: {}]   ;;  %s396_s3 = inlined_call_operand.hbm [shape: bf16[32,96], index: 3, kind: input, shape index: {}]   ;;  %s397_s4 = inlined_call_operand.vmem [shape: f32[1,96], index: 4, kind: input, shape index: {}]   ;;  %s398_s5 = inlined_call_operand.hbm [shape: f32[16,96], index: 5, kind: output, shape index: {}]  }
   0x1   :  { %11 = vsyncpa [#allocation6], 0  ;;  %s31_s20 = sshll.u32 %s394_s1, 4  ;;  %s32_s20 = int_to_ptr.hbm [resolvable:$true] %s31_s20 }
   0x2   :  { %12 = vsyncpa [#allocation4], 0  ;;  %s325_s21 = smov [#allocation5]   ;;  %s17_s25 = sshll.u32 %s393_s0, 4  ;;  %s18_s25 = int_to_ptr.hbm [resolvable:$true] %s17_s25 }
   0x3   :  { %s33_s22 = sshll.u32 %s325_s21, 4  ;;  %s326_s26 = smov [#allocation2]   ;;  %s34_s22 = int_to_ptr.vmem [resolvable:$true] %s33_s22 }
   0x4   :  { %36 = dma.hbm_to_vmem [thread:$0]  %s32_s20, 16, %s34_s22, [#allocation6]  }
   0x5   :  { %s19_s27 = sshll.u32 %s326_s26, 4  ;;  %s327_s28 = smov 128   ;;  %s20_s27 = int_to_ptr.vmem [resolvable:$true] %s19_s27 }
   0x6   :  { %s328_s29 = smov 8   ;;  %s43_s6 = sshll.u32 %s396_s3, 4  ;;  %s44_s6 = int_to_ptr.hbm [resolvable:$true] %s43_s6 }
   0x7   :  { %25 = dma.hbm_to_vmem [thread:$0]  %s18_s25, 256, %s20_s27, [#allocation3], %s327_s28, %s327_s28, %s328_s29  }
   0x8   :  { %s329_s7 = smov [#allocation7]   ;;  %s330_s0 = smov 64  }
   0x9   :  { %s45_s8 = sshll.u32 %s329_s7, 4  ;;  %s331_s9 = smov 4   ;;  %s46_s8 = int_to_ptr.vmem [resolvable:$true] %s45_s8 }
   0xa   :  { %51 = dma.hbm_to_vmem [thread:$0]  %s44_s6, 256, %s46_s8, [#allocation6], %s330_s0, %s330_s0, %s331_s9  }
   0xb   :  { %319 = dma.done.wait [#allocation3], 256  }
   0xc   :  { %320 = vsyncadd [#allocation3], 4294967040 }
   0xd   :  { %321 = dma.done.wait [#allocation6], 272  }
   0xe   :  { %322 = vsyncadd [#allocation6], 4294967024  ;;  %vm69_vm0 = vcmask 261120   ;;  %v67_v0 = vld [vmem:[#allocation2] sm:$0xff]  ;;  %v68_v2 = vld [vmem:[#allocation2 + $0x8] sm:$0xff]  ;;  %v332_v4 = vmov 32.0  }
   0xf   :  { %v70_v1 = vsel %vm69_vm0, %v67_v0, 0.0  ;;  %v73_v3 = vsel %vm69_vm0, %v68_v2, 0.0  ;;  %217 = vrcp.f32 %v332_v4  ;;  %v204_v21 = vld [vmem:[#allocation7 + $0x8] sm:$0xff]  ;;  %v203_v23 = vld [vmem:[#allocation7] sm:$0xff]  ;;  %v214_v42 = vld [vmem:[#allocation5] ss:$0 sm:$0xff] }
  0x10   :  { %71 = vadd.xlane.f32.xlu0 %v70_v1  ;;  %163 = vmatpush.bf16.msra.mxu0 %v204_v21  ;;  %v215_v47 = vld [vmem:[%s395_s2] ss:$0 sm:$0xff]  ;;  %vm171_vm8 = vcmask 785408   ;;  %s333_s13 = smov [#allocation8]   ;;  %s180_s2 = sshll.u32 %s398_s5, 4  ;;  %s181_s2 = int_to_ptr.hbm [resolvable:$true] %s180_s2 }
  0x11   :  { %v216_v52 = vld [vmem:[%s397_s4] ss:$0 sm:$0xff]  ;;  %s178_s14 = sshll.u32 %s333_s13, 4  ;;  %s179_s14 = int_to_ptr.vmem [resolvable:$true] %s178_s14 }
  0x14   :  { %164 = vmatpush.bf16.msra.mxu0 %v203_v23 }
  0x15   :  { %v218_v5 = vpop.eup %217 }
  0x16   :  { %v77_v6 = vmul.f32 32.0, %v218_v5  ;;  %vm81_vm1 = vweird.f32 %v218_v5 }
  0x18   :  { %74 = vadd.xlane.f32.xlu0 %v73_v3  ;;  %v78_v7 = vsub.f32 1.0, %v77_v6 }
  0x1a   :  { %v79_v8 = vmul.f32 %v218_v5, %v78_v7 }
  0x1c   :  { %v80_v9 = vadd.f32 %v218_v5, %v79_v8 }
  0x1e   :  { %v82_v10 = vsel %vm81_vm1, %v218_v5, %v80_v9 }
  0x83   :  { %v72_v11 = vpop.xlane.xlu0 %71 }
  0x84   :  { %v83_v12 = vmul.f32 %v82_v10, %v72_v11 }
  0x86   :  { %v85_v13 = vsub.f32 %v67_v0, %v83_v12 }
  0x88   :  { %v87_v14 = vmul.f32 %v85_v13, %v85_v13 }
  0x8a   :  { %v89_v15 = vsel %vm69_vm0, %v87_v14, 0.0 }
  0x8b   :  { %90 = vadd.xlane.f32.xlu1 %v89_v15  ;;  %v75_v16 = vpop.xlane.xlu0 %74 }
  0x8c   :  { %v84_v17 = vmul.f32 %v82_v10, %v75_v16 }
  0x8e   :  { %v86_v18 = vsub.f32 %v68_v2, %v84_v17 }
  0x90   :  { %v88_v19 = vmul.f32 %v86_v18, %v86_v18 }
  0x92   :  { %v92_v20 = vsel %vm69_vm0, %v88_v19, 0.0 }
  0x93   :  { %93 = vadd.xlane.f32.xlu1 %v92_v20 }
  0xfe   :  { %v91_v22 = vpop.xlane.xlu1 %90 }
  0xff   :  { %v95_v24 = vmul.f32 %v91_v22, %v82_v10 }
 0x101   :  { %v97_v25 = vadd.f32 1e-05, %v95_v24 }
 0x103   :  { %219 = vrsqrt.f32 %v97_v25  ;;  %vm105_vm3 = vweird.f32 %v97_v25 }
 0x106   :  { %v94_v26 = vpop.xlane.xlu1 %93 }
 0x107   :  { %v96_v27 = vmul.f32 %v94_v26, %v82_v10 }
 0x109   :  { %v220_v28 = vpop.eup %219  ;;  %v98_v29 = vadd.f32 1e-05, %v96_v27 }
 0x10a   :  { %v100_v30 = vmul.f32 %v220_v28, %v97_v25  ;;  %vm106_vm2 = vweird.f32 %v220_v28 }
 0x10b   :  { %221 = vrsqrt.f32 %v98_v29  ;;  %vm107_vm4 = vmor %vm105_vm3, %vm106_vm2  ;;  %vm115_vm6 = vweird.f32 %v98_v29 }
 0x10c   :  { %v101_v31 = vmul.f32 %v220_v28, %v100_v30 }
 0x10e   :  { %v102_v32 = vmul.f32 0.5, %v101_v31 }
 0x110   :  { %v103_v33 = vsub.f32 1.5, %v102_v32 }
 0x111   :  { %v222_v34 = vpop.eup %221 }
 0x112   :  { %v104_v35 = vmul.f32 %v220_v28, %v103_v33  ;;  %v110_v36 = vmul.f32 %v222_v34, %v98_v29  ;;  %vm116_vm5 = vweird.f32 %v222_v34 }
 0x113   :  { %vm117_vm7 = vmor %vm115_vm6, %vm116_vm5 }
 0x114   :  { %v111_v37 = vmul.f32 %v222_v34, %v110_v36  ;;  %v108_v38 = vsel %vm107_vm4, %v220_v28, %v104_v35 }
 0x115   :  { %v119_v41 = vmul.f32 %v108_v38, %v85_v13 }
 0x116   :  { %v112_v39 = vmul.f32 0.5, %v111_v37 }
 0x117   :  { %v125_v46 = vmul.f32 %v214_v42, %v119_v41 }
 0x118   :  { %v113_v40 = vsub.f32 1.5, %v112_v39 }
 0x119   :  { %v131_v49 = vadd.f32 %v215_v47, %v125_v46 }
 0x11a   :  { %v114_v43 = vmul.f32 %v222_v34, %v113_v40 }
 0x11c   :  { %v118_v44 = vsel %vm117_vm7, %v222_v34, %v114_v43 }
 0x11d   :  { %v120_v45 = vmul.f32 %v118_v44, %v86_v18 }
 0x11f   :  { %v126_v48 = vmul.f32 %v214_v42, %v120_v45 }
 0x121   :  { %v132_v50 = vadd.f32 %v215_v47, %v126_v48 }
 0x123   :  { %v133_v51 = vpack.c.bf16 %v132_v50, %v131_v49 }
 0x125   :  { %202 = vmatmul.msk.bf16.vlgmr.msra.gmra.mxu0 %vm69_vm0, %v133_v51 }
 0x1a2   :  { %v166_v53 = vpop.f32.mrf.mxu0 }
 0x1a3   :  { %v167_v54 = vadd.f32 %v216_v52, %v166_v53 }
 0x1a5   :  { %172 = vst.msk [vmem:[#allocation8] sm:$0xff] %vm171_vm8, %v167_v54 }
 0x1aa   :  { %v168_v55 = vpop.f32.mrf.mxu0 }
 0x1ab   :  { %v169_v56 = vadd.f32 %v216_v52, %v168_v55 }
 0x1ad   :  { %173 = vst.msk [vmem:[#allocation8 + $0x8] sm:$0xff] %vm171_vm8, %v169_v56 }
 0x1ae   :  { %186 = dma.vmem_to_hbm [thread:$0]  %s179_s14, 256, %s181_s2, [#allocation4], %s327_s28, %s327_s28, %s328_s29  }
 0x1af   :  { %323 = dma.done.wait [#allocation4], 256  }
 0x1b0   :  { %324 = vsyncadd [#allocation4], 4294967040 }
 0x1b1   :  { %191 = vsyncpa [#allocation3], 1 }
 0x1b2   :  { %192 = vsyncpa [#allocation6], 1 }
 0x1b3   :  { %193 = vsyncpa [#allocation4], 1 }

</bundles_post_ra>
